<compile_context>
chip_gen: v7x
topology: tpu7x:2x2x1
jax: 0.10.0
libtpu: 0.0.40
codegen_flags: <defaults>
</compile_context>

<pallas_src>
import numpy as np
import jax
import jax.numpy as jnp
from jax import lax
from jax.experimental import pallas as pl
from jax.experimental.pallas import tpu as pltpu


# ----------------------------------------------------------------------------
# Fused Pallas kernel (conv chain + reflect pad + strided sinc downconv)
# ----------------------------------------------------------------------------
def _make_fused_block_kernel(depth, kernel_size, down_k, stride, l_in,
                             compute_dtype):
    """Builds the fused kernel body (closure over static configuration)."""
    assert depth >= 1

    def kernel(*refs):
        x_ref = refs[0]
        w_refs = refs[1:1 + depth]            # packed (C_out, K*C_in + 1) each
        f_ref = refs[1 + depth]               # (C, down_k) sinc filter (f32)
        out_ref = refs[2 + depth]             # (1, C, L_down)
        short_ref = refs[3 + depth]           # (1, C, L_short)

        # ---- pre_shortcut_convs: depth x (single packed matmul + leaky_relu)
        h = x_ref[0].astype(compute_dtype)    # (C_in, L)
        l_cur = l_in
        h32 = None
        for d in range(depth):
            w = w_refs[d][...]                # (C_out, K*C_in + 1)
            l_out = l_cur - kernel_size + 1
            # Patch matrix: K shifted slices stacked along the contraction
            # axis + a ones row so the bias column of `w` performs the bias add.
            patches = jnp.concatenate(
                [h[:, k:k + l_out] for k in range(kernel_size)]
                + [jnp.ones((1, l_out), compute_dtype)], axis=0)
            acc = jnp.dot(w, patches, preferred_element_type=jnp.float32)
            h32 = jnp.where(acc > 0, acc, 0.01 * acc)   # leaky_relu in f32
            h = h32.astype(compute_dtype)
            l_cur = l_out

        short_ref[0] = h32.astype(short_ref.dtype)

        # ---- downconv: Resample1d (reflect pad + fixed sinc depthwise, stride)
        l_s = l_cur
        pad = (down_k - 1) // 2
        # Reflect halos built in VMEM from single-column slices (torch reflect).
        left = [h32[:, i:i + 1] for i in range(pad, 0, -1)]
        right = [h32[:, l_s - 1 - i:l_s - i] for i in range(1, pad + 1)]
        xp = jnp.concatenate(left + [h32] + right, axis=1)    # (C, L_s + 2*pad)

        filt = f_ref[...]                                     # (C, down_k) f32
        full = jnp.zeros(h32.shape, jnp.float32)              # stride-1 output
        for k in range(down_k):                               # VPU MACs
            full = full + filt[:, k:k + 1] * xp[:, k:k + l_s]

        # Strided subsample out[:, j] = full[:, j*stride], done in-kernel via a
        # 0/1 selection matmul (exact; avoids strided lane slices which do not
        # reliably lower on Mosaic).  Only the downsampled output hits HBM.
        l_down = (l_s - 1) // stride + 1
        row = lax.broadcasted_iota(jnp.int32, (l_s, l_down), 0)
        col = lax.broadcasted_iota(jnp.int32, (l_s, l_down), 1)
        sel = (row == col * stride).astype(jnp.float32)
        out = jnp.dot(full, sel, preferred_element_type=jnp.float32)
        out_ref[0] = out.astype(out_ref.dtype)

    return kernel


# ----------------------------------------------------------------------------
# Wrapper: weight packing + BlockSpecs
# ----------------------------------------------------------------------------
def downsampling_block_forward(x, conv_params, sinc_filter, stride,
                               compute_dtype=jnp.float32):
    """Mirrors DownsamplingBlock.forward (conv_type='normal', res='fixed').

    Returns (out, shortcut).  `compute_dtype=jnp.bfloat16` feeds the MXU in
    bf16 (f32 accumulation); f32 default for bit-tight accuracy / v5e.
    """
    B, c_in0, L = x.shape
    depth = len(conv_params)
    kernel_size = conv_params[0][0].shape[-1]
    down_k = sinc_filter.shape[-1]

    # Pack each ConvLayer as (C_out, K*C_in + 1): tap-major columns matching
    # the in-kernel patch matrix, with the bias folded in as the last column.
    packed = []
    l_cur = L
    ci = c_in0
    for (w, b) in conv_params:
        c_out, w_cin, k = w.shape
        assert w_cin == ci and k == kernel_size
        wp = jnp.transpose(w, (0, 2, 1)).reshape(c_out, k * w_cin)
        wp = jnp.concatenate([wp, b[:, None]], axis=1).astype(compute_dtype)
        packed.append(wp)
        l_cur = l_cur - kernel_size + 1
        ci = c_out
    l_short = l_cur
    c_last = ci
    assert l_short % stride == 1, "Resample1d requires input_size % stride == 1"
    l_down = (l_short - 1) // stride + 1

    filt = sinc_filter.reshape(c_last, down_k).astype(jnp.float32)

    kern = _make_fused_block_kernel(depth, kernel_size, down_k, stride, L,
                                    compute_dtype)

    in_specs = ([pl.BlockSpec((1, c_in0, L), lambda i: (i, 0, 0))]
                + [pl.BlockSpec(wp.shape, lambda i: (0, 0)) for wp in packed]
                + [pl.BlockSpec((c_last, down_k), lambda i: (0, 0))])
    out_specs = (pl.BlockSpec((1, c_last, l_down), lambda i: (i, 0, 0)),
                 pl.BlockSpec((1, c_last, l_short), lambda i: (i, 0, 0)))

    out, shortcut = pl.pallas_call(
        kern,
        out_shape=(jax.ShapeDtypeStruct((B, c_last, l_down), x.dtype),
                   jax.ShapeDtypeStruct((B, c_last, l_short), x.dtype)),
        grid=(B,),
        in_specs=in_specs,
        out_specs=out_specs,
        compiler_params=pltpu.CompilerParams(
            dimension_semantics=("parallel",),
            vmem_limit_bytes=32 * 1024 * 1024),
    )(x, *packed, filt)
    return out, shortcut


# ----------------------------------------------------------------------------
# Parameter construction + pure-JAX reference (for correctness checking)
# ----------------------------------------------------------------------------
def build_sinc_filter(kernel_size, cutoff):
    """Windowed-sinc lowpass filter, identical to Wave-U-Net's build_sinc_filter."""
    assert kernel_size % 2 == 1
    M = kernel_size - 1
    f = np.zeros(kernel_size, dtype=np.float64)
    for i in range(kernel_size):
        if i == M // 2:
            f[i] = 2 * np.pi * cutoff
        else:
            f[i] = (np.sin(2 * np.pi * cutoff * (i - M // 2)) / (i - M // 2)) * (
                0.42 - 0.5 * np.cos((2 * np.pi * i) / M)
                + 0.08 * np.cos((4 * np.pi * M * i) / M))
    f = f / np.sum(f)
    return f.astype(np.float32)


def reference_forward(x, conv_params, sinc_filter, stride):
    """Pure-JAX reference (no Pallas) for correctness checking."""
    s = x
    for w, b in conv_params:
        s = lax.conv_general_dilated(
            s, w, (1,), "VALID", dimension_numbers=("NCH", "OIH", "NCH"))
        s = s + b[None, :, None]
        s = jnp.where(s > 0, s, 0.01 * s)
    num_pad = (sinc_filter.shape[-1] - 1) // 2
    xp = jnp.pad(s, ((0, 0), (0, 0), (num_pad, num_pad)), mode="reflect")
    out = lax.conv_general_dilated(
        xp, sinc_filter, (stride,), "VALID",
        dimension_numbers=("NCH", "OIH", "NCH"),
        feature_group_count=s.shape[1])
    return out, s


if __name__ == "__main__":
    # Small config: n_inputs=4, n_shortcut=8, n_outputs=8, kernel_size=5,
    #               stride=2, depth=2, conv_type='normal', res='fixed'
    B, n_inputs, n_outputs = 2, 4, 8
    kernel_size, stride, depth = 5, 2, 2
    L = 25                                        # -> shortcut length 17 (odd, ok)

    key = jax.random.PRNGKey(0)
    keys = jax.random.split(key, 2 * depth + 1)
    conv_params = []
    c_in = n_inputs
    for d in range(depth):
        w = (jax.random.normal(keys[2 * d], (n_outputs, c_in, kernel_size),
                               jnp.float32) * 0.1)
        b = (jax.random.normal(keys[2 * d + 1], (n_outputs,), jnp.float32) * 0.1)
        conv_params.append((w, b))
        c_in = n_outputs

    sinc = jnp.asarray(
        np.repeat(build_sinc_filter(15, 0.5 / stride)[None, None, :],
                  n_outputs, axis=0))             # (C, 1, 15) fixed depthwise filter

    x = jax.random.normal(keys[-1], (B, n_inputs, L), jnp.float32)

    # f32 path (exact vs. reference)
    out, shortcut = downsampling_block_forward(x, conv_params, sinc, stride)
    out, shortcut = jax.block_until_ready((out, shortcut))

    ref_out, ref_short = reference_forward(x, conv_params, sinc, stride)
    np.testing.assert_allclose(np.asarray(shortcut), np.asarray(ref_short),
                               rtol=1e-5, atol=1e-5)
    np.testing.assert_allclose(np.asarray(out), np.asarray(ref_out),
                               rtol=1e-5, atol=1e-5)

    assert shortcut.shape == (B, n_outputs, L - depth * (kernel_size - 1))
    assert out.shape == (B, n_outputs, (shortcut.shape[2] - 1) // stride + 1)

    # bf16 MXU path (v6e/v7x): bf16 activations/weights into the MXU, f32
    # accumulation and f32 bias/leaky_relu/depthwise tail.  Loose tolerance.
    out_bf, short_bf = downsampling_block_forward(
        x, conv_params, sinc, stride, compute_dtype=jnp.bfloat16)
    out_bf, short_bf = jax.block_until_ready((out_bf, short_bf))
    np.testing.assert_allclose(np.asarray(short_bf), np.asarray(ref_short),
                               rtol=5e-2, atol=5e-2)
    np.testing.assert_allclose(np.asarray(out_bf), np.asarray(ref_out),
                               rtol=5e-2, atol=5e-2)

    print("KERNEL_OK")
</pallas_src>

<mosaic_0001>
module attributes {stable_mosaic.version = 11 : i64} {
  func.func @kernel(%arg0: i32, %arg1: memref<1x4x25xf32, #tpu.memory_space<vmem>>, %arg2: memref<8x21xf32, #tpu.memory_space<vmem>>, %arg3: memref<8x41xf32, #tpu.memory_space<vmem>>, %arg4: memref<8x15xf32, #tpu.memory_space<vmem>>, %arg5: memref<1x8x9xf32, #tpu.memory_space<vmem>>, %arg6: memref<1x8x17xf32, #tpu.memory_space<vmem>>) attributes {dimension_semantics = [#tpu.dimension_semantics<parallel>], iteration_bounds = array<i64: 2>, scalar_prefetch = 0 : i64, scratch_operands = 0 : i64, tpu.core_type = #tpu.core_type<tc>, window_params = [{transform_indices = @transform_0, window_bounds = array<i64: 1, 4, 25>}, {pipeline_mode = #tpu.pipeline_mode<synchronous>, transform_indices = @transform_1, window_bounds = array<i64: 8, 21>}, {pipeline_mode = #tpu.pipeline_mode<synchronous>, transform_indices = @transform_2, window_bounds = array<i64: 8, 41>}, {pipeline_mode = #tpu.pipeline_mode<synchronous>, transform_indices = @transform_3, window_bounds = array<i64: 8, 15>}, {transform_indices = @transform_4, window_bounds = array<i64: 1, 8, 9>}, {transform_indices = @transform_5, window_bounds = array<i64: 1, 8, 17>}]} {
    %c0 = arith.constant 0 : index
    %c0_0 = arith.constant 0 : index
    %c0_1 = arith.constant 0 : index
    %0 = vector.load %arg1[%c0, %c0_0, %c0_1] : memref<1x4x25xf32, #tpu.memory_space<vmem>>, vector<1x4x25xf32>
    %1 = vector.shape_cast %0 : vector<1x4x25xf32> to vector<4x25xf32>
    %c0_2 = arith.constant 0 : index
    %c0_3 = arith.constant 0 : index
    %2 = vector.load %arg2[%c0_2, %c0_3] : memref<8x21xf32, #tpu.memory_space<vmem>>, vector<8x21xf32>
    %3 = vector.extract_strided_slice %1 {offsets = [0, 0], sizes = [4, 21], strides = [1, 1]} : vector<4x25xf32> to vector<4x21xf32>
    %4 = vector.extract_strided_slice %1 {offsets = [0, 1], sizes = [4, 21], strides = [1, 1]} : vector<4x25xf32> to vector<4x21xf32>
    %5 = vector.extract_strided_slice %1 {offsets = [0, 2], sizes = [4, 21], strides = [1, 1]} : vector<4x25xf32> to vector<4x21xf32>
    %6 = vector.extract_strided_slice %1 {offsets = [0, 3], sizes = [4, 21], strides = [1, 1]} : vector<4x25xf32> to vector<4x21xf32>
    %7 = vector.extract_strided_slice %1 {offsets = [0, 4], sizes = [4, 21], strides = [1, 1]} : vector<4x25xf32> to vector<4x21xf32>
    %cst = arith.constant 1.000000e+00 : f32
    %8 = vector.broadcast %cst : f32 to vector<1x21xf32>
    %9 = tpu.concatenate %3, %4, %5, %6, %7, %8 in 0 : vector<4x21xf32>, vector<4x21xf32>, vector<4x21xf32>, vector<4x21xf32>, vector<4x21xf32>, vector<1x21xf32> -> vector<21x21xf32>
    %cst_4 = arith.constant dense<0.000000e+00> : vector<8x21xf32>
    %10 = tpu.matmul %2, %9, %cst_4 {dimension_numbers = #tpu.dot_dimension_numbers<[1], [0], [0], [1], [0, 0, 1, 1], [], []>} : vector<8x21xf32>, vector<21x21xf32>, vector<8x21xf32> -> vector<8x21xf32>
    %cst_5 = arith.constant 0.000000e+00 : f32
    %11 = vector.broadcast %cst_5 : f32 to vector<8x21xf32>
    %12 = arith.cmpf ogt, %10, %11 : vector<8x21xf32>
    %cst_6 = arith.constant 0.00999999977 : f32
    %13 = vector.broadcast %cst_6 : f32 to vector<8x21xf32>
    %14 = arith.mulf %13, %10 : vector<8x21xf32>
    %15 = arith.select %12, %10, %14 : vector<8x21xi1>, vector<8x21xf32>
    %c0_7 = arith.constant 0 : index
    %c0_8 = arith.constant 0 : index
    %16 = vector.load %arg3[%c0_7, %c0_8] : memref<8x41xf32, #tpu.memory_space<vmem>>, vector<8x41xf32>
    %17 = vector.extract_strided_slice %15 {offsets = [0, 0], sizes = [8, 17], strides = [1, 1]} : vector<8x21xf32> to vector<8x17xf32>
    %18 = vector.extract_strided_slice %15 {offsets = [0, 1], sizes = [8, 17], strides = [1, 1]} : vector<8x21xf32> to vector<8x17xf32>
    %19 = vector.extract_strided_slice %15 {offsets = [0, 2], sizes = [8, 17], strides = [1, 1]} : vector<8x21xf32> to vector<8x17xf32>
    %20 = vector.extract_strided_slice %15 {offsets = [0, 3], sizes = [8, 17], strides = [1, 1]} : vector<8x21xf32> to vector<8x17xf32>
    %21 = vector.extract_strided_slice %15 {offsets = [0, 4], sizes = [8, 17], strides = [1, 1]} : vector<8x21xf32> to vector<8x17xf32>
    %cst_9 = arith.constant 1.000000e+00 : f32
    %22 = vector.broadcast %cst_9 : f32 to vector<1x17xf32>
    %23 = tpu.concatenate %17, %18, %19, %20, %21, %22 in 0 : vector<8x17xf32>, vector<8x17xf32>, vector<8x17xf32>, vector<8x17xf32>, vector<8x17xf32>, vector<1x17xf32> -> vector<41x17xf32>
    %cst_10 = arith.constant dense<0.000000e+00> : vector<8x17xf32>
    %24 = tpu.matmul %16, %23, %cst_10 {dimension_numbers = #tpu.dot_dimension_numbers<[1], [0], [0], [1], [0, 0, 1, 1], [], []>} : vector<8x41xf32>, vector<41x17xf32>, vector<8x17xf32> -> vector<8x17xf32>
    %cst_11 = arith.constant 0.000000e+00 : f32
    %25 = vector.broadcast %cst_11 : f32 to vector<8x17xf32>
    %26 = arith.cmpf ogt, %24, %25 : vector<8x17xf32>
    %cst_12 = arith.constant 0.00999999977 : f32
    %27 = vector.broadcast %cst_12 : f32 to vector<8x17xf32>
    %28 = arith.mulf %27, %24 : vector<8x17xf32>
    %29 = arith.select %26, %24, %28 : vector<8x17xi1>, vector<8x17xf32>
    %c0_13 = arith.constant 0 : index
    %c0_14 = arith.constant 0 : index
    %c0_15 = arith.constant 0 : index
    %30 = vector.load %arg6[%c0_13, %c0_14, %c0_15] : memref<1x8x17xf32, #tpu.memory_space<vmem>>, vector<1x8x17xf32>
    %31 = vector.shape_cast %30 : vector<1x8x17xf32> to vector<8x17xf32>
    %32 = vector.shape_cast %29 : vector<8x17xf32> to vector<1x8x17xf32>
    tpu.vector_store %arg6[%c0_13, %c0_14, %c0_15], %32 {strides = array<i32>} : memref<1x8x17xf32, #tpu.memory_space<vmem>>, vector<1x8x17xf32>,
    %33 = vector.extract_strided_slice %29 {offsets = [0, 7], sizes = [8, 1], strides = [1, 1]} : vector<8x17xf32> to vector<8x1xf32>
    %34 = vector.extract_strided_slice %29 {offsets = [0, 6], sizes = [8, 1], strides = [1, 1]} : vector<8x17xf32> to vector<8x1xf32>
    %35 = vector.extract_strided_slice %29 {offsets = [0, 5], sizes = [8, 1], strides = [1, 1]} : vector<8x17xf32> to vector<8x1xf32>
    %36 = vector.extract_strided_slice %29 {offsets = [0, 4], sizes = [8, 1], strides = [1, 1]} : vector<8x17xf32> to vector<8x1xf32>
    %37 = vector.extract_strided_slice %29 {offsets = [0, 3], sizes = [8, 1], strides = [1, 1]} : vector<8x17xf32> to vector<8x1xf32>
    %38 = vector.extract_strided_slice %29 {offsets = [0, 2], sizes = [8, 1], strides = [1, 1]} : vector<8x17xf32> to vector<8x1xf32>
    %39 = vector.extract_strided_slice %29 {offsets = [0, 1], sizes = [8, 1], strides = [1, 1]} : vector<8x17xf32> to vector<8x1xf32>
    %40 = vector.extract_strided_slice %29 {offsets = [0, 15], sizes = [8, 1], strides = [1, 1]} : vector<8x17xf32> to vector<8x1xf32>
    %41 = vector.extract_strided_slice %29 {offsets = [0, 14], sizes = [8, 1], strides = [1, 1]} : vector<8x17xf32> to vector<8x1xf32>
    %42 = vector.extract_strided_slice %29 {offsets = [0, 13], sizes = [8, 1], strides = [1, 1]} : vector<8x17xf32> to vector<8x1xf32>
    %43 = vector.extract_strided_slice %29 {offsets = [0, 12], sizes = [8, 1], strides = [1, 1]} : vector<8x17xf32> to vector<8x1xf32>
    %44 = vector.extract_strided_slice %29 {offsets = [0, 11], sizes = [8, 1], strides = [1, 1]} : vector<8x17xf32> to vector<8x1xf32>
    %45 = vector.extract_strided_slice %29 {offsets = [0, 10], sizes = [8, 1], strides = [1, 1]} : vector<8x17xf32> to vector<8x1xf32>
    %46 = vector.extract_strided_slice %29 {offsets = [0, 9], sizes = [8, 1], strides = [1, 1]} : vector<8x17xf32> to vector<8x1xf32>
    %47 = tpu.concatenate %33, %34, %35, %36, %37, %38, %39, %29, %40, %41, %42, %43, %44, %45, %46 in 1 : vector<8x1xf32>, vector<8x1xf32>, vector<8x1xf32>, vector<8x1xf32>, vector<8x1xf32>, vector<8x1xf32>, vector<8x1xf32>, vector<8x17xf32>, vector<8x1xf32>, vector<8x1xf32>, vector<8x1xf32>, vector<8x1xf32>, vector<8x1xf32>, vector<8x1xf32>, vector<8x1xf32> -> vector<8x31xf32>
    %c0_16 = arith.constant 0 : index
    %c0_17 = arith.constant 0 : index
    %48 = vector.load %arg4[%c0_16, %c0_17] : memref<8x15xf32, #tpu.memory_space<vmem>>, vector<8x15xf32>
    %cst_18 = arith.constant 0.000000e+00 : f32
    %49 = vector.broadcast %cst_18 : f32 to vector<8x17xf32>
    %50 = vector.extract_strided_slice %48 {offsets = [0, 0], sizes = [8, 1], strides = [1, 1]} : vector<8x15xf32> to vector<8x1xf32>
    %51 = vector.extract_strided_slice %47 {offsets = [0, 0], sizes = [8, 17], strides = [1, 1]} : vector<8x31xf32> to vector<8x17xf32>
    %52 = vector.broadcast %50 : vector<8x1xf32> to vector<8x17xf32>
    %53 = arith.mulf %52, %51 : vector<8x17xf32>
    %54 = arith.addf %49, %53 : vector<8x17xf32>
    %55 = vector.extract_strided_slice %48 {offsets = [0, 1], sizes = [8, 1], strides = [1, 1]} : vector<8x15xf32> to vector<8x1xf32>
    %56 = vector.extract_strided_slice %47 {offsets = [0, 1], sizes = [8, 17], strides = [1, 1]} : vector<8x31xf32> to vector<8x17xf32>
    %57 = vector.broadcast %55 : vector<8x1xf32> to vector<8x17xf32>
    %58 = arith.mulf %57, %56 : vector<8x17xf32>
    %59 = arith.addf %54, %58 : vector<8x17xf32>
    %60 = vector.extract_strided_slice %48 {offsets = [0, 2], sizes = [8, 1], strides = [1, 1]} : vector<8x15xf32> to vector<8x1xf32>
    %61 = vector.extract_strided_slice %47 {offsets = [0, 2], sizes = [8, 17], strides = [1, 1]} : vector<8x31xf32> to vector<8x17xf32>
    %62 = vector.broadcast %60 : vector<8x1xf32> to vector<8x17xf32>
    %63 = arith.mulf %62, %61 : vector<8x17xf32>
    %64 = arith.addf %59, %63 : vector<8x17xf32>
    %65 = vector.extract_strided_slice %48 {offsets = [0, 3], sizes = [8, 1], strides = [1, 1]} : vector<8x15xf32> to vector<8x1xf32>
    %66 = vector.extract_strided_slice %47 {offsets = [0, 3], sizes = [8, 17], strides = [1, 1]} : vector<8x31xf32> to vector<8x17xf32>
    %67 = vector.broadcast %65 : vector<8x1xf32> to vector<8x17xf32>
    %68 = arith.mulf %67, %66 : vector<8x17xf32>
    %69 = arith.addf %64, %68 : vector<8x17xf32>
    %70 = vector.extract_strided_slice %48 {offsets = [0, 4], sizes = [8, 1], strides = [1, 1]} : vector<8x15xf32> to vector<8x1xf32>
    %71 = vector.extract_strided_slice %47 {offsets = [0, 4], sizes = [8, 17], strides = [1, 1]} : vector<8x31xf32> to vector<8x17xf32>
    %72 = vector.broadcast %70 : vector<8x1xf32> to vector<8x17xf32>
    %73 = arith.mulf %72, %71 : vector<8x17xf32>
    %74 = arith.addf %69, %73 : vector<8x17xf32>
    %75 = vector.extract_strided_slice %48 {offsets = [0, 5], sizes = [8, 1], strides = [1, 1]} : vector<8x15xf32> to vector<8x1xf32>
    %76 = vector.extract_strided_slice %47 {offsets = [0, 5], sizes = [8, 17], strides = [1, 1]} : vector<8x31xf32> to vector<8x17xf32>
    %77 = vector.broadcast %75 : vector<8x1xf32> to vector<8x17xf32>
    %78 = arith.mulf %77, %76 : vector<8x17xf32>
    %79 = arith.addf %74, %78 : vector<8x17xf32>
    %80 = vector.extract_strided_slice %48 {offsets = [0, 6], sizes = [8, 1], strides = [1, 1]} : vector<8x15xf32> to vector<8x1xf32>
    %81 = vector.extract_strided_slice %47 {offsets = [0, 6], sizes = [8, 17], strides = [1, 1]} : vector<8x31xf32> to vector<8x17xf32>
    %82 = vector.broadcast %80 : vector<8x1xf32> to vector<8x17xf32>
    %83 = arith.mulf %82, %81 : vector<8x17xf32>
    %84 = arith.addf %79, %83 : vector<8x17xf32>
    %85 = vector.extract_strided_slice %48 {offsets = [0, 7], sizes = [8, 1], strides = [1, 1]} : vector<8x15xf32> to vector<8x1xf32>
    %86 = vector.extract_strided_slice %47 {offsets = [0, 7], sizes = [8, 17], strides = [1, 1]} : vector<8x31xf32> to vector<8x17xf32>
    %87 = vector.broadcast %85 : vector<8x1xf32> to vector<8x17xf32>
    %88 = arith.mulf %87, %86 : vector<8x17xf32>
    %89 = arith.addf %84, %88 : vector<8x17xf32>
    %90 = vector.extract_strided_slice %48 {offsets = [0, 8], sizes = [8, 1], strides = [1, 1]} : vector<8x15xf32> to vector<8x1xf32>
    %91 = vector.extract_strided_slice %47 {offsets = [0, 8], sizes = [8, 17], strides = [1, 1]} : vector<8x31xf32> to vector<8x17xf32>
    %92 = vector.broadcast %90 : vector<8x1xf32> to vector<8x17xf32>
    %93 = arith.mulf %92, %91 : vector<8x17xf32>
    %94 = arith.addf %89, %93 : vector<8x17xf32>
    %95 = vector.extract_strided_slice %48 {offsets = [0, 9], sizes = [8, 1], strides = [1, 1]} : vector<8x15xf32> to vector<8x1xf32>
    %96 = vector.extract_strided_slice %47 {offsets = [0, 9], sizes = [8, 17], strides = [1, 1]} : vector<8x31xf32> to vector<8x17xf32>
    %97 = vector.broadcast %95 : vector<8x1xf32> to vector<8x17xf32>
    %98 = arith.mulf %97, %96 : vector<8x17xf32>
    %99 = arith.addf %94, %98 : vector<8x17xf32>
    %100 = vector.extract_strided_slice %48 {offsets = [0, 10], sizes = [8, 1], strides = [1, 1]} : vector<8x15xf32> to vector<8x1xf32>
    %101 = vector.extract_strided_slice %47 {offsets = [0, 10], sizes = [8, 17], strides = [1, 1]} : vector<8x31xf32> to vector<8x17xf32>
    %102 = vector.broadcast %100 : vector<8x1xf32> to vector<8x17xf32>
    %103 = arith.mulf %102, %101 : vector<8x17xf32>
    %104 = arith.addf %99, %103 : vector<8x17xf32>
    %105 = vector.extract_strided_slice %48 {offsets = [0, 11], sizes = [8, 1], strides = [1, 1]} : vector<8x15xf32> to vector<8x1xf32>
    %106 = vector.extract_strided_slice %47 {offsets = [0, 11], sizes = [8, 17], strides = [1, 1]} : vector<8x31xf32> to vector<8x17xf32>
    %107 = vector.broadcast %105 : vector<8x1xf32> to vector<8x17xf32>
    %108 = arith.mulf %107, %106 : vector<8x17xf32>
    %109 = arith.addf %104, %108 : vector<8x17xf32>
    %110 = vector.extract_strided_slice %48 {offsets = [0, 12], sizes = [8, 1], strides = [1, 1]} : vector<8x15xf32> to vector<8x1xf32>
    %111 = vector.extract_strided_slice %47 {offsets = [0, 12], sizes = [8, 17], strides = [1, 1]} : vector<8x31xf32> to vector<8x17xf32>
    %112 = vector.broadcast %110 : vector<8x1xf32> to vector<8x17xf32>
    %113 = arith.mulf %112, %111 : vector<8x17xf32>
    %114 = arith.addf %109, %113 : vector<8x17xf32>
    %115 = vector.extract_strided_slice %48 {offsets = [0, 13], sizes = [8, 1], strides = [1, 1]} : vector<8x15xf32> to vector<8x1xf32>
    %116 = vector.extract_strided_slice %47 {offsets = [0, 13], sizes = [8, 17], strides = [1, 1]} : vector<8x31xf32> to vector<8x17xf32>
    %117 = vector.broadcast %115 : vector<8x1xf32> to vector<8x17xf32>
    %118 = arith.mulf %117, %116 : vector<8x17xf32>
    %119 = arith.addf %114, %118 : vector<8x17xf32>
    %120 = vector.extract_strided_slice %48 {offsets = [0, 14], sizes = [8, 1], strides = [1, 1]} : vector<8x15xf32> to vector<8x1xf32>
    %121 = vector.extract_strided_slice %47 {offsets = [0, 14], sizes = [8, 17], strides = [1, 1]} : vector<8x31xf32> to vector<8x17xf32>
    %122 = vector.broadcast %120 : vector<8x1xf32> to vector<8x17xf32>
    %123 = arith.mulf %122, %121 : vector<8x17xf32>
    %124 = arith.addf %119, %123 : vector<8x17xf32>
    %125 = tpu.iota {dimensions = array<i32: 0>} : vector<17x9xi32>
    %126 = tpu.iota {dimensions = array<i32: 1>} : vector<17x9xi32>
    %c2_i32 = arith.constant 2 : i32
    %127 = vector.broadcast %c2_i32 : i32 to vector<17x9xi32>
    %128 = arith.muli %126, %127 : vector<17x9xi32>
    %129 = arith.cmpi eq, %125, %128 : vector<17x9xi32>
    %130 = arith.extui %129 : vector<17x9xi1> to vector<17x9xi32>
    %131 = arith.sitofp %130 : vector<17x9xi32> to vector<17x9xf32>
    %cst_19 = arith.constant dense<0.000000e+00> : vector<8x9xf32>
    %132 = tpu.matmul %124, %131, %cst_19 {dimension_numbers = #tpu.dot_dimension_numbers<[1], [0], [0], [1], [0, 0, 1, 1], [], []>} : vector<8x17xf32>, vector<17x9xf32>, vector<8x9xf32> -> vector<8x9xf32>
    %c0_20 = arith.constant 0 : index
    %c0_21 = arith.constant 0 : index
    %c0_22 = arith.constant 0 : index
    %133 = vector.load %arg5[%c0_20, %c0_21, %c0_22] : memref<1x8x9xf32, #tpu.memory_space<vmem>>, vector<1x8x9xf32>
    %134 = vector.shape_cast %133 : vector<1x8x9xf32> to vector<8x9xf32>
    %135 = vector.shape_cast %132 : vector<8x9xf32> to vector<1x8x9xf32>
    tpu.vector_store %arg5[%c0_20, %c0_21, %c0_22], %135 {strides = array<i32>} : memref<1x8x9xf32, #tpu.memory_space<vmem>>, vector<1x8x9xf32>,
    return
  }
  func.func @transform_0(%arg0: i32) -> (i32, i32, i32) {
    %c0_i32 = arith.constant 0 : i32
    %c0_i32_0 = arith.constant 0 : i32
    %c0_i32_1 = arith.constant 0 : i32
    return %arg0, %c0_i32, %c0_i32_0 : i32, i32, i32
  }
  func.func @transform_1(%arg0: i32) -> (i32, i32) {
    %c0_i32 = arith.constant 0 : i32
    %c0_i32_0 = arith.constant 0 : i32
    %c0_i32_1 = arith.constant 0 : i32
    return %c0_i32, %c0_i32_0 : i32, i32
  }
  func.func @transform_2(%arg0: i32) -> (i32, i32) {
    %c0_i32 = arith.constant 0 : i32
    %c0_i32_0 = arith.constant 0 : i32
    %c0_i32_1 = arith.constant 0 : i32
    return %c0_i32, %c0_i32_0 : i32, i32
  }
  func.func @transform_3(%arg0: i32) -> (i32, i32) {
    %c0_i32 = arith.constant 0 : i32
    %c0_i32_0 = arith.constant 0 : i32
    %c0_i32_1 = arith.constant 0 : i32
    return %c0_i32, %c0_i32_0 : i32, i32
  }
  func.func @transform_4(%arg0: i32) -> (i32, i32, i32) {
    %c0_i32 = arith.constant 0 : i32
    %c0_i32_0 = arith.constant 0 : i32
    %c0_i32_1 = arith.constant 0 : i32
    return %arg0, %c0_i32, %c0_i32_0 : i32, i32, i32
  }
  func.func @transform_5(%arg0: i32) -> (i32, i32, i32) {
    %c0_i32 = arith.constant 0 : i32
    %c0_i32_0 = arith.constant 0 : i32
    %c0_i32_1 = arith.constant 0 : i32
    return %arg0, %c0_i32, %c0_i32_0 : i32, i32, i32
  }
}

</mosaic_0001>

<bundles_post_ra>
// kernel: tpu_custom_call.1
= control target key start
LH: loop header
LB: loop body
LE: loop exit
PB: predicated region body
PF: predicated region fallthrough
CT: control target
= control target key end

     0   :  { %11 = vsyncpa [#allocation3], 0  ;;  %s1759_s0 = inlined_call_operand.hbm [shape: f32[2,4,25], index: 0, kind: input, shape index: {}]   ;;  %s1760_s1 = inlined_call_operand.hbm [shape: f32[8,21], index: 1, kind: input, shape index: {}]   ;;  %s1761_s2 = inlined_call_operand.hbm [shape: f32[8,41], index: 2, kind: input, shape index: {}]   ;;  %s1762_s3 = inlined_call_operand.vmem [shape: f32[8,15], index: 3, kind: input, shape index: {}]   ;;  %s1763_s4 = inlined_call_operand.hbm [shape: f32[2,8,9], index: 4, kind: output, shape index: {0}]   ;;  %s1764_s5 = inlined_call_operand.hbm [shape: f32[2,8,17], index: 5, kind: output, shape index: {1}]  }
   0x1   :  { %13 = vsyncpa [#allocation3 + $0x1], 0 }
   0x2   :  { %14 = vsyncpa [#allocation6], 0 }
   0x3   :  { %15 = vsyncpa [#allocation4], 0 }
   0x4   :  { %17 = vsyncpa [#allocation4 + $0x1], 0 }
   0x5   :  { %18 = vsyncpa [#allocation10], 0 }
   0x6   :  { %20 = vsyncpa [#allocation10 + $0x1], 0  ;;  %s1442_s18 = smov 0   ;;  %s1444_s19 = smov 0  }
   0x7   :  { %s1446_s20 = smov 0   ;;  %s1448_s21 = smov 0  }
   0x8 LB: > { %s1463_s22 = sadd.s32 4294967295, %s1359_s21   ;;  %s943_s23 = sadd.s32 4294967294, %s1359_s21   ;;  %s1359_s21 = sphi %s1448_s21, %s1784_s21   ;;  %s1355_s20 = sphi %s1446_s20, %s1783_s20   ;;  %s1351_s19 = sphi %s1444_s19, %s1782_s19   ;;  %s1347_s18 = sphi %s1442_s18, %s1781_s18  }
   0x9   : > { %p46_p0 = scmp.ne.s32.totalorder %s1351_s19, %s1347_s18  ;;  %p1765_p1 = scmp.eq.s32.totalorder %s1463_s22, 0 }
   0xa   : > { %p139_p3 = scmp.eq.s32.totalorder %s943_s23, 1  ;;  %p944_p5 = scmp.ge.s32.totalorder %s1359_s21, 1 }
   0xb   : > { %p1472_p4 = por %p1765_p1, %p46_p0  ;;  %p172_p7 = scmp.lt.s32.totalorder %s1359_s21, 3 }
   0xc   : > { %p1477_p6 = por %p139_p3, %p46_p0  ;;  %s1361_s27 = smov [#allocation5]  }
   0xd   : > { %s1768_s24 = scalar_select %p1472_p4, 1, 0 }
   0xe   : > { %s1769_s25 = scalar_select %p1477_p6, 1, 0 }
   0xf   : > { %p1482_p8 = pnand %p944_p5, %p172_p7  ;;  %s185_s28 = sshll.u32 %s1361_s27, 4  ;;  %s186_s28 = int_to_ptr.vmem [resolvable:$true] %s185_s28 }
  0x10   : > { %s1362_s29 = smov [#allocation7]   ;;  %s1498_s7 = sadd.s32 1, %s1359_s21  }
  0x11   : > { %s1770_s26 = scalar_select %p1482_p8, 1, 0 }
  0x12   : > { %p1051_p10 = pneg %p1482_p8  ;;  %s196_s30 = sshll.u32 %s1362_s29, 4  ;;  %s1495_s30 = int_to_ptr.vmem [resolvable:$true] %s196_s30 }
  0x13   : > { %s30_s8 = ssub.s32 %s1359_s21, %s1498_s7  ;;  %s1171_s11 = scalar_lea.hbm %s1760_s1, 128 }
  0x14   : > { %p1491_p11 = pnand %p1051_p10, %p1765_p1  ;;  %p1172_p12 = scmp.ne.s32.totalorder %s1760_s1, %s1171_s11 }
  0x15   : > { %p1178_p5 = scmp.lt.u32.totalorder %s1171_s11, %s1760_s1 }
  0x16   : > { %p1173_p13 = pneg %p1491_p11 }
  0x18   : > { %p1174_p0 = pnand %p1173_p13, %p1172_p12 }
  0x1a   : > { %p1175_p3 = pneg %p1174_p0 }
  0x1c   : > { %p1180_p7 = pnand %p1178_p5, %p1175_p3 }
  0x1e   : > { %1183 = shalt.err (!%p1180_p7)
}
  0x1f   : > { %s1184_s16 = scalar_lea.vmem %s186_s28, 128  ;;  %p1192_p2 = scmp.lt.s32.totalorder %s186_s28, %s186_s28 }
  0x20   : > { %p1185_p10 = scmp.ne.s32.totalorder %s186_s28, %s1184_s16  ;;  %p1193_p6 = scmp.lt.s32.totalorder %s1184_s16, %s1184_s16 }
  0x22   : > { %p1187_p9 = pnand %p1185_p10, %p1173_p13  ;;  %p1194_p4 = por %p1193_p6, %p1192_p2 }
  0x24   : > { %p1188_p1 = pneg %p1187_p9 }
  0x26   : > { %p1195_p8 = pnand %p1194_p4, %p1188_p1 }
  0x28   : > { %1198 = shalt.err (!%p1195_p8)
}
  0x29   : > { %1054 = dma.hbm_to_vmem [thread:$0]  (!%p1491_p11), %s1760_s1, 128, %s186_s28, [#allocation6]  }
  0x2a   : > { %s1199_s9 = scalar_lea.hbm %s1761_s2, 128 }
  0x2b   : > { %p1200_p9 = scmp.ne.s32.totalorder %s1761_s2, %s1199_s9  ;;  %p1206_p4 = scmp.lt.u32.totalorder %s1199_s9, %s1761_s2 }
  0x2d   : > { %p1202_p2 = pnand %p1200_p9, %p1173_p13 }
  0x2f   : > { %p1203_p1 = pneg %p1202_p2 }
  0x31   : > { %p1208_p6 = pnand %p1206_p4, %p1203_p1 }
  0x33   : > { %1211 = shalt.err (!%p1208_p6)
}
  0x34   : > { %s1212_s28 = scalar_lea.vmem %s1495_s30, 128  ;;  %p1220_p3 = scmp.lt.s32.totalorder %s1495_s30, %s1495_s30 }
  0x35   : > { %p1213_p8 = scmp.ne.s32.totalorder %s1495_s30, %s1212_s28  ;;  %p1221_p5 = scmp.lt.s32.totalorder %s1212_s28, %s1212_s28 }
  0x37   : > { %p1215_p12 = pnand %p1213_p8, %p1173_p13  ;;  %p1222_p7 = por %p1221_p5, %p1220_p3 }
  0x39   : > { %p1216_p0 = pneg %p1215_p12 }
  0x3b   : > { %p1223_p10 = pnand %p1222_p7, %p1216_p0 }
  0x3d   : > { %1226 = shalt.err (!%p1223_p10)
}
  0x3e   : > { %1057 = dma.hbm_to_vmem [thread:$0]  (!%p1491_p11), %s1761_s2, 128, %s1495_s30, [#allocation6]  }
  0x3f   : > { %p31_p13 = scmp.eq.s32.totalorder %s30_s8, 0  ;;  %s33_s16 = sadd.s32 1, %s1355_s20 }
  0x40   : > { %p40_p9 = scmp.ne.s32.totalorder %s1355_s20, %s1351_s19  ;;  %p41_p2 = scmp.eq.s32.totalorder %s1359_s21, 0 }
  0x41   : > { %s1557_s6 = scalar_select %p31_p13, %s1355_s20, %s33_s16  }
  0x42   : > { %p42_p1 = por %p41_p2, %p40_p9  ;;  %p1772_p4 = scmp.eq.s32.totalorder %s1463_s22, 1 }
  0x43   : > { %p1071_p8 = scmp.lt.s32.totalorder %s1359_s21, 2  ;;  %s210_s23 = sand.u32 1, %s1355_s20  }
  0x44   : > { %p1561_p6 = por %p1772_p4, %p40_p9  ;;  %s948_s27 = sshll.u32 %s210_s23, 2 }
  0x45   : > { %s949_s29 = sshll.u32 %s1359_s21, 6  ;;  %s214_s8 = scalar_lea.vmem [#allocation2], %s948_s27 }
  0x46   : > { %s1571_s30 = scalar_lea.hbm %s1759_s0, %s949_s29  ;;  %s221_s11 = sshll.u32 %s214_s8, 4  ;;  %s1573_s11 = int_to_ptr.vmem [resolvable:$true] %s221_s11 }
  0x47   : > { %p1575_p11 = pnand %p1071_p8, %p42_p1  ;;  %s211_s13 = scalar_lea.sflag [#allocation3], %s210_s23 }
  0x48   : > { %s1227_s28 = scalar_lea.hbm %s1571_s30, 64  ;;  %s1232_s16 = scalar_lea.hbm %s1759_s0, 128 }
  0x49   : > { %p1228_p12 = scmp.ne.s32.totalorder %s1571_s30, %s1227_s28  ;;  %p1229_p0 = pneg %p1575_p11 }
  0x4a   : > { %p1233_p7 = scmp.lt.u32.totalorder %s1571_s30, %s1759_s0  ;;  %p1234_p10 = scmp.lt.u32.totalorder %s1232_s16, %s1227_s28 }
  0x4b   : > { %p1230_p3 = pnand %p1229_p0, %p1228_p12  ;;  %p1236_p9 = scmp.lt.u32.totalorder %s1227_s28, %s1571_s30 }
  0x4c   : > { %p1235_p13 = por %p1234_p10, %p1233_p7 }
  0x4d   : > { %p1231_p5 = pneg %p1230_p3 }
  0x4e   : > { %p1237_p2 = por %p1236_p9, %p1235_p13 }
  0x50   : > { %p1238_p1 = pnand %p1237_p2, %p1231_p5 }
  0x52   : > { %1241 = shalt.err (!%p1238_p1)
}
  0x53   : > { %s1242_s23 = scalar_lea.vmem %s1573_s11, 64  ;;  %s1363_s9 = smov [#allocation2]  }
  0x54   : > { %p1243_p4 = scmp.ne.s32.totalorder %s1573_s11, %s1242_s23  ;;  %s1247_s10 = sshll.u32 %s1363_s9, 4  ;;  %s1248_s10 = int_to_ptr.vmem [resolvable:$false] %s1247_s10 }
  0x55   : > { %s1249_s8 = scalar_lea.vmem %s1248_s10, 128  ;;  %p1250_p3 = scmp.lt.s32.totalorder %s1573_s11, %s1248_s10 }
  0x56   : > { %p1245_p8 = pnand %p1243_p4, %p1229_p0  ;;  %p1251_p7 = scmp.lt.s32.totalorder %s1249_s8, %s1242_s23 }
  0x58   : > { %p1246_p12 = pneg %p1245_p8  ;;  %p1252_p10 = por %p1251_p7, %p1250_p3 }
  0x5a   : > { %p1253_p13 = pnand %p1252_p10, %p1246_p12 }
  0x5c   : > { %1256 = shalt.err (!%p1253_p13)
}
  0x5d   : > { %1061 = dma.hbm_to_vmem [thread:$0]  (!%p1575_p11), %s1571_s30, 64, %s1573_s11, %s211_s13  }
  0x5e   : > { %p1775_p5 = scmp.ne.s32.totalorder %s1770_s26, 0 }
  0x5f   : > { %s1607_s28 = sand.u32 (!%p1775_p5), 1, %s1351_s19   ;;  %p1776_p0 = scmp.ne.s32.totalorder (!%p1775_p5), %s1768_s24, 0 }
  0x60   : > { %230 = sbr.rel (%p1775_p5) target bundleno = 1336 (0x538), region = 36  ;;  %s951_s14 = sshll.u32 (!%p1775_p5), %s1607_s28, 2 }
  0x61   : > { %s233_s15 = scalar_lea.sflag (!%p1775_p5), [#allocation3], %s1607_s28  ;;  %s236_s16 = scalar_lea.vmem (!%p1775_p5), [#allocation2], %s951_s14 }
  0x67   : > { %1330 = dma.done.wait (%p1776_p0), %s233_s15, 64  }
  0x68   : > { %1332 = vsyncadd (%p1776_p0), %s233_s15, 4294967232  ;;  %p1777_p9 = scmp.eq.s32.totalorder %s1463_s22, 0 }
  0x6a   : > { %1334 = dma.done.wait (%p1777_p9), [#allocation6], 256   ;;  %p1778_p11 = pmov %p1777_p9 }
  0x6b   : > { %v1364_v0 = vmov 0.0|0.0   ;;  %v276_v1 = vld [vmem:[%s236_s16] sm:$0xf]  ;;  %vm1365_vm0 = vmmov 0   ;;  %v1366_v3 = vmov 0.0   ;;  %s1367_s24 = smov 127  }
  0x6c   : > { %1336 = vsyncadd (%p1778_p11), [#allocation6], 4294967040  ;;  %1021 = vmatprep.subr.bf16.mxu0 %v1364_v0  ;;  %1024 = vmatprep.subr.bf16.mxu1 %v1364_v0  ;;  %v279_v2 = vrot.slane %v276_v1, 4  ;;  %s1368_s26 = smov 125   ;;  %s1369_s30 = smov 126   ;;  %vm292_vm1 = vcmask 1043456  }
  0x6d   : > { %994 = vmatprep.mubr.msk.f32.mxu0 %vm1365_vm0, %v1366_v3  ;;  %1009 = vmatprep.mubr.msk.f32.mxu1 %vm1365_vm0, %v1366_v3  ;;  %s1370_s11 = smov 124   ;;  %vm300_vm2 = vcmask 1044480   ;;  %v277_v12 = vld [vmem:[#allocation5] sm:$0xff]  ;;  %vm296_vm3 = vcmask 171008   ;;  %v1371_v17 = vmov 2   ;;  %v1372_v18 = vmov 1  }
  0x6e   : > { %280 = vrot.lane.b32.xlu0 %v279_v2, %s1367_s24  ;;  %286 = vrot.lane.b32.xlu1 %v279_v2, %s1368_s26  ;;  %v1640_v19 = vld [vmem:[%s1762_s3] sm:$0xff]  ;;  %v1373_v20 = vmov 3   ;;  %vm395_vm5 = vcmask 1040384   ;;  %vm1374_vm6 = vmmov 1   ;;  %v1375_v27 = vmov 1.0   ;;  %v377_v29 = vld [vmem:[#allocation7] sm:$0xff] }
  0x6f   : > { %1156 = vset.pattern.permute.xlu0 %v1371_v17  ;;  %1155 = vset.pattern.permute.xlu1 %v1372_v18  ;;  %vm1032_vm7 = vmpackc.low %vm395_vm5, %vm1374_vm6  ;;  %vm391_vm8 = vcmask 334848   ;;  %v1376_v30 = vmov 5   ;;  %v1377_v31 = vmov 4   ;;  %s954_s27 = sshll.u32 %s1607_s28, 3  ;;  %vm472_vm10 = vcmask 138240   ;;  %s1378_s29 = smov 123  }
  0x70   : > { %s1379_s23 = smov 121   ;;  %s1653_s9 = scalar_lea.vmem [#allocation9], %s954_s27  ;;  %v1385_v36 = vmov 6   ;;  %v1388_v37 = vmov 8   ;;  %v1389_v38 = vmov 7   ;;  %v1392_v39 = vmov 10  }
  0x71   : > { %s1380_s10 = smov 3   ;;  %s1381_s8 = smov 1   ;;  %v1394_v40 = vmov 13   ;;  %v1396_v41 = vmov 14   ;;  %v1397_v42 = vmov 9   ;;  %v1398_v43 = vmov 11  }
  0x72   : > { %283 = vrot.lane.b32.xlu0 %v276_v1, %s1369_s30  ;;  %289 = vrot.lane.b32.xlu1 %v276_v1, %s1370_s11  ;;  %s1382_s14 = smov 7   ;;  %s1383_s15 = smov 5   ;;  %v1399_v44 = vmov 12   ;;  %v1400_v45 = vmov 0   ;;  %vm520_vm11 = vcmask 7168   ;;  %vm522_vm12 = vcmask 15360  }
  0x73   : > { %s1384_s16 = smov 9   ;;  %s1386_s12 = smov 11   ;;  %vm524_vm13 = vcmask 23552   ;;  %vm526_vm14 = vcmask 31744   ;;  %vm528_vm15 = vcmask 39936   ;;  %vm540_vm6 = vcmask 220160  }
  0x74   : > { %s1387_s13 = smov 13  }
  0xe0   : > { %v281_v4 = vpop.permute.xlu0 %280  ;;  %v287_v5 = vpop.permute.xlu1 %286 }
  0xe1   : > { %v293_v7 = vsel %vm292_vm1, %v276_v1, %v281_v4 }
  0xe4   : > { %v284_v6 = vpop.permute.xlu0 %283  ;;  %v290_v10 = vpop.permute.xlu1 %289 }
  0xe5   : > { %v294_v8 = vsel %vm292_vm1, %v284_v6, %v287_v5  ;;  %v295_v11 = vsel %vm292_vm1, %v290_v10, 1.0  ;;  %vm532_vm1 = vcmask 56320  }
  0xe6   : > { %v1022_v9 = vpack.c.bf16 %v294_v8, %v293_v7 }
  0xe8   : > { %1023 = vmatpush3.bf16.msra.mxu0 %v1022_v9 }
  0xe9   : > { %992 = vmatprep.subr.mxu0 %v1366_v3 }
  0xec   : > { %993 = vmatpush3.msk.msra.mxu0 %vm300_vm2, %v295_v11  ;;  %vm534_vm2 = vcmask 195584  }
  0xed   : > { %995 = vmatmul.mubr.msk.f32.vlgmr.msra.gmra.mrb[0].mxu0 %vm296_vm3, %v277_v12  ;;  %1034 = vmatprep.subr.bf16.mxu0 %v1364_v0  ;;  %vm536_vm3 = vcmask 203776  }
  0xee   : > { %1018 = vmatprep.mubr.msk.f32.mxu0 %vm1365_vm0, %v1366_v3  ;;  %vm530_vm0 = vcmask 48128  }
 0x1c0   : > { %v370_v13 = vpop.f32.mrb[0].mxu0 }
 0x1c1   : > { %vm374_vm4 = vcmp.gt.f32.partialorder %v370_v13, 0.0  ;;  %v375_v14 = vmul.f32 0.01, %v370_v13  ;;  %v996_v15 = vpop.f32.mrb[1].mxu0 }
 0x1c3   : > { %v376_v16 = vsel %vm374_vm4, %v370_v13, %v375_v14  ;;  %vm538_vm4 = vcmask 211968  }
 0x1c4   : > { %382 = vrot.lane.b32.xlu1 %v376_v16, %s1369_s30  ;;  %379 = vrot.lane.b32.xlu0 %v376_v16, %s1367_s24 }
 0x1c8   : > { %388 = vrot.lane.b32.xlu1 %v376_v16, %s1370_s11  ;;  %385 = vrot.lane.b32.xlu0 %v376_v16, %s1368_s26 }
 0x1cc   : > { %567 = vperm.xlu0 %1156, %v1640_v19   ;;  %557 = vperm.xlu1 %1155, %v1640_v19  }
 0x1d0   : > { %1157 = vset.pattern.permute.xlu0 %v1373_v20  ;;  %1159 = vset.pattern.permute.xlu1 %v1376_v30 }
 0x1d1   : > { %577 = vperm.xlu0 %1157, %v1640_v19  }
 0x1d5   : > { %1158 = vset.pattern.permute.xlu0 %v1377_v31 }
 0x236   : > { %v383_v21 = vpop.permute.xlu1 %382  ;;  %v380_v22 = vpop.permute.xlu0 %379 }
 0x237   : > { %v1025_v23 = vpack.c.bf16 %v380_v22, %v376_v16 }
 0x239   : > { %1026 = vmatpush3.bf16.msra.mxu1 %v1025_v23  ;;  %v696_v23 = vlaneseq }
 0x23a   : > { %v386_v24 = vpop.permute.xlu0 %385  ;;  %1027 = vmatprep.subr.bf16.mxu1 %v1364_v0  ;;  %v389_v26 = vpop.permute.xlu1 %388 }
 0x23b   : > { %v1028_v25 = vpack.c.bf16 %v386_v24, %v383_v21  ;;  %v1031_v28 = vpack.c.bf16 %v1375_v27, %v389_v26  ;;  %v697_v27 = vshrl.u32 %v696_v23, 7 }
 0x23d   : > { %1029 = vmatpush3.bf16.msra.mxu1 %v1028_v25  ;;  %v698_v30 = vadd.s32 8, %v697_v27 }
 0x23e   : > { %1030 = vmatprep.subr.bf16.mxu1 %v1364_v0 }
 0x241   : > { %1033 = vmatpush3.bf16.msk.msra.mxu1 %vm1032_vm7, %v1031_v28  ;;  %vm542_vm7 = vcmask 228352   ;;  %v701_v28 = vand.u32 127, %v696_v23 }
 0x243   : > { %v702_v31 = vmul.u32 2, %v701_v28 }
 0x244   : > { %1010 = vmatmul.mubr.msk.f32.vlgmr.msra.gmra.mrb[0].mxu1 %vm391_vm8, %v377_v29  ;;  %vm544_vm8 = vcmask 236544  }
 0x24b   : > { %v558_v46 = vpop.permute.xlu1 %557  ;;  %v568_v47 = vpop.permute.xlu0 %567 }
 0x250   : > { %v578_v49 = vpop.permute.xlu0 %577 }
 0x317   : > { %v465_v32 = vpop.f32.mrb[0].mxu1 }
 0x318   : > { %vm469_vm9 = vcmp.gt.f32.partialorder %v465_v32, 0.0  ;;  %v470_v33 = vmul.f32 0.01, %v465_v32  ;;  %v1011_v34 = vpop.f32.mrb[1].mxu1 }
 0x31a   : > { %v471_v35 = vsel %vm469_vm9, %v465_v32, %v470_v33  ;;  %vm546_vm9 = vcmask 244736  }
 0x31b   : > { %478 = vrot.lane.b32.xlu1 %v471_v35, %s1378_s29  ;;  %475 = vrot.lane.b32.xlu0 %v471_v35, %s1379_s23  ;;  %473 = vst.msk [vmem:[%s1653_s9] sm:$0xff] %vm472_vm10, %v471_v35 }
 0x31f   : > { %484 = vrot.lane.b32.xlu1 %v471_v35, %s1367_s24  ;;  %481 = vrot.lane.b32.xlu0 %v471_v35, %s1368_s26 }
 0x323   : > { %490 = vrot.lane.b32.xlu1 %v471_v35, %s1380_s10  ;;  %487 = vrot.lane.b32.xlu0 %v471_v35, %s1381_s8  ;;  %s1390_s10 = smov 15   ;;  %s1391_s8 = smov 17  }
 0x327   : > { %496 = vrot.lane.b32.xlu1 %v471_v35, %s1382_s14  ;;  %493 = vrot.lane.b32.xlu0 %v471_v35, %s1383_s15  ;;  %s1393_s14 = smov 19   ;;  %s1395_s15 = smov 21  }
 0x32b   : > { %597 = vperm.xlu1 %1159, %v1640_v19   ;;  %499 = vrot.lane.b32.xlu0 %v471_v35, %s1384_s16  ;;  %s1401_s16 = smov 122  }
 0x32f   : > { %1160 = vset.pattern.permute.xlu1 %v1385_v36  ;;  %502 = vrot.lane.b32.xlu0 %v471_v35, %s1386_s12  ;;  %s1409_s12 = smov 115  }
 0x330   : > { %607 = vperm.xlu1 %1160, %v1640_v19  }
 0x333   : > { %587 = vperm.xlu0 %1158, %v1640_v19  }
 0x334   : > { %505 = vrot.lane.b32.xlu1 %v471_v35, %s1387_s13  ;;  %s969_s13 = sshll.u32 %s1463_s22, 7 }
 0x335   : > { %1162 = vset.pattern.permute.xlu1 %v1388_v37  ;;  %v1403_v37 = vmov 1.0|1.0  }
 0x337   : > { %1161 = vset.pattern.permute.xlu0 %v1389_v38 }
 0x338   : > { %508 = vrot.lane.b32.xlu1 %v471_v35, %s1390_s10  ;;  %617 = vperm.xlu0 %1161, %v1640_v19  }
 0x33c   : > { %511 = vrot.lane.b32.xlu1 %v471_v35, %s1391_s8  ;;  %1164 = vset.pattern.permute.xlu0 %v1392_v39 }
 0x33d   : > { %647 = vperm.xlu0 %1164, %v1640_v19  }
 0x340   : > { %514 = vrot.lane.b32.xlu1 %v471_v35, %s1393_s14  ;;  %s1687_s14 = scalar_lea.hbm %s1764_s5, %s969_s13 }
 0x341   : > { %1167 = vset.pattern.permute.xlu0 %v1394_v40 }
 0x342   : > { %677 = vperm.xlu0 %1167, %v1640_v19  }
 0x344   : > { %517 = vrot.lane.b32.xlu1 %v471_v35, %s1395_s15  ;;  %v699_v35 = vadd.s32 16, %v697_v27  ;;  %s822_s15 = sshll.u32 %s1653_s9, 4  ;;  %s823_s15 = int_to_ptr.vmem [resolvable:$true] %s822_s15 }
 0x346   : > { %1170 = vset.pattern.permute.xlu0 %v1396_v41 }
 0x348   : > { %627 = vperm.xlu1 %1162, %v1640_v19  }
 0x34c   : > { %1163 = vset.pattern.permute.xlu1 %v1397_v42 }
 0x34d   : > { %637 = vperm.xlu1 %1163, %v1640_v19  }
 0x351   : > { %1165 = vset.pattern.permute.xlu1 %v1398_v43 }
 0x352   : > { %657 = vperm.xlu1 %1165, %v1640_v19  }
 0x356   : > { %1166 = vset.pattern.permute.xlu1 %v1399_v44 }
 0x357   : > { %667 = vperm.xlu1 %1166, %v1640_v19  }
 0x35b   : > { %1168 = vset.pattern.permute.xlu1 %v1396_v41 }
 0x35c   : > { %687 = vperm.xlu1 %1168, %v1640_v19  }
 0x360   : > { %1169 = vset.pattern.permute.xlu1 %v1400_v45 }
 0x361   : > { %551 = vperm.xlu1 %1169, %v1640_v19  }
 0x38d   : > { %v479_v48 = vpop.permute.xlu1 %478  ;;  %v476_v51 = vpop.permute.xlu0 %475 }
 0x38e   : > { %v521_v59 = vsel %vm520_vm11, %v476_v51, %v479_v48  ;;  %vm703_vm11 = vcmp.eq.s32.totalorder %v697_v27, %v702_v31 }
 0x391   : > { %v485_v50 = vpop.permute.xlu1 %484  ;;  %v482_v53 = vpop.permute.xlu0 %481 }
 0x392   : > { %v523_v60 = vsel %vm522_vm12, %v521_v59, %v482_v53  ;;  %vm704_vm12 = vcmp.eq.s32.totalorder %v698_v30, %v702_v31 }
 0x393   : > { %v525_v62 = vsel %vm524_vm13, %v523_v60, %v485_v50  ;;  %vm1035_vm13 = vmpackc.low %vm704_vm12, %vm703_vm11 }
 0x394   : > { %1036 = vmatpush3.bf16.msk.msra.mxu0 %vm1035_vm13, %v1403_v37 }
 0x395   : > { %v491_v52 = vpop.permute.xlu1 %490  ;;  %v488_v55 = vpop.permute.xlu0 %487  ;;  %1016 = vmatprep.subr.mxu0 %v1366_v3 }
 0x396   : > { %v527_v63 = vsel %vm526_vm14, %v525_v62, %v488_v55  ;;  %vm705_vm14 = vcmp.eq.s32.totalorder %v699_v35, %v702_v31 }
 0x397   : > { %v529_v2 = vsel %vm528_vm15, %v527_v63, %v491_v52  ;;  %v962_v41 = vsel %vm705_vm14, 1.0, %v1366_v3 }
 0x398   : > { %1017 = vmatpush3.msk.msra.mxu0 %vm395_vm5, %v962_v41 }
 0x399   : > { %v497_v54 = vpop.permute.xlu1 %496  ;;  %v494_v58 = vpop.permute.xlu0 %493 }
 0x39a   : > { %v531_v4 = vsel %vm530_vm0, %v529_v2, %v494_v58 }
 0x39b   : > { %v533_v7 = vsel %vm532_vm1, %v531_v4, %v497_v54 }
 0x39d   : > { %v500_v0 = vpop.permute.xlu0 %499 }
 0x39e   : > { %v535_v8 = vsel %vm534_vm2, %v533_v7, %v500_v0 }
 0x3a1   : > { %v503_v6 = vpop.permute.xlu0 %502 }
 0x3a2   : > { %v537_v9 = vsel %vm536_vm3, %v535_v8, %v503_v6 }
 0x3aa   : > { %v598_v56 = vpop.permute.xlu1 %597 }
 0x3af   : > { %v608_v57 = vpop.permute.xlu1 %607 }
 0x3b2   : > { %v588_v20 = vpop.permute.xlu0 %587 }
 0x3b3   : > { %v506_v61 = vpop.permute.xlu1 %505 }
 0x3b4   : > { %v539_v11 = vsel %vm538_vm4, %v537_v9, %v506_v61 }
 0x3b7   : > { %v509_v1 = vpop.permute.xlu1 %508  ;;  %v618_v29 = vpop.permute.xlu0 %617 }
 0x3b8   : > { %v541_v12 = vsel %vm540_vm6, %v539_v11, %v509_v1 }
 0x3bb   : > { %v512_v5 = vpop.permute.xlu1 %511 }
 0x3bc   : > { %v543_v13 = vsel %vm542_vm7, %v541_v12, %v512_v5  ;;  %v648_v36 = vpop.permute.xlu0 %647 }
 0x3bf   : > { %v515_v10 = vpop.permute.xlu1 %514 }
 0x3c0   : > { %v545_v14 = vsel %vm544_vm8, %v543_v13, %v515_v10 }
 0x3c1   : > { %v678_v44 = vpop.permute.xlu0 %677 }
 0x3c3   : > { %v518_v15 = vpop.permute.xlu1 %517 }
 0x3c4   : > { %v547_v16 = vsel %vm546_vm9, %v545_v14, %v518_v15 }
 0x3c5   : > { %v570_v17 = vmul.f32 %v568_v47, %v547_v16  ;;  %v560_v18 = vmul.f32 %v558_v46, %v547_v16  ;;  %v580_v21 = vmul.f32 %v578_v49, %v547_v16  ;;  %v590_v22 = vmul.f32 %v588_v20, %v547_v16 }
 0x3c6   : > { %v600_v25 = vmul.f32 %v598_v56, %v547_v16  ;;  %v610_v26 = vmul.f32 %v608_v57, %v547_v16  ;;  %v620_v32 = vmul.f32 %v618_v29, %v547_v16  ;;  %v650_v39 = vmul.f32 %v648_v36, %v547_v16 }
 0x3c7   : > { %v628_v19 = vpop.permute.xlu1 %627  ;;  %572 = vrot.lane.b32.xlu1 %v570_v17, %s1369_s30  ;;  %562 = vrot.lane.b32.xlu0 %v560_v18, %s1367_s24  ;;  %s1402_s24 = smov 120   ;;  %s1405_s30 = smov 118   ;;  %v680_v47 = vmul.f32 %v678_v44, %v547_v16 }
 0x3c8   : > { %v630_v33 = vmul.f32 %v628_v19, %v547_v16 }
 0x3cb   : > { %582 = vrot.lane.b32.xlu0 %v580_v21, %s1368_s26  ;;  %592 = vrot.lane.b32.xlu1 %v590_v22, %s1370_s11  ;;  %s1404_s26 = smov 119   ;;  %s1406_s11 = smov 117  }
 0x3cc   : > { %v638_v24 = vpop.permute.xlu1 %637 }
 0x3cd   : > { %v640_v38 = vmul.f32 %v638_v24, %v547_v16 }
 0x3cf   : > { %602 = vrot.lane.b32.xlu0 %v600_v25, %s1378_s29  ;;  %612 = vrot.lane.b32.xlu1 %v610_v26, %s1401_s16  ;;  %s1407_s29 = smov 116   ;;  %s796_s16 = scalar_lea.sflag [#allocation10], %s1607_s28 }
 0x3d1   : > { %v658_v34 = vpop.permute.xlu1 %657 }
 0x3d2   : > { %v660_v42 = vmul.f32 %v658_v34, %v547_v16 }
 0x3d3   : > { %632 = vrot.lane.b32.xlu1 %v630_v33, %s1402_s24  ;;  %622 = vrot.lane.b32.xlu0 %v620_v32, %s1379_s23  ;;  %s1408_s23 = smov 114   ;;  %s1257_s24 = scalar_lea.vmem %s823_s15, 128 }
 0x3d4   : > { %p1258_p2 = scmp.ne.s32.totalorder %s823_s15, %s1257_s24 }
 0x3d6   : > { %v668_v40 = vpop.permute.xlu1 %667  ;;  %p1259_p1 = pnand %p1258_p2, %p1561_p6 }
 0x3d7   : > { %642 = vrot.lane.b32.xlu0 %v640_v38, %s1404_s26  ;;  %652 = vrot.lane.b32.xlu1 %v650_v39, %s1405_s30  ;;  %v670_v43 = vmul.f32 %v668_v40, %v547_v16  ;;  %s1410_s26 = smov [#allocation9]  }
 0x3d8   : > { %p1260_p4 = pneg %p1259_p1  ;;  %s1261_s30 = sshll.u32 %s1410_s26, 4  ;;  %s1262_s30 = int_to_ptr.vmem [resolvable:$false] %s1261_s30 }
 0x3d9   : > { %p1264_p8 = scmp.lt.s32.totalorder %s823_s15, %s1262_s30 }
 0x3db   : > { %v688_v45 = vpop.permute.xlu1 %687  ;;  %662 = vrot.lane.b32.xlu0 %v660_v42, %s1406_s11  ;;  %672 = vrot.lane.b32.xlu1 %v670_v43, %s1407_s29  ;;  %s1263_s11 = scalar_lea.vmem %s1262_s30, 256 }
 0x3dc   : > { %v690_v46 = vmul.f32 %v688_v45, %v547_v16  ;;  %p1265_p12 = scmp.lt.s32.totalorder %s1263_s11, %s1257_s24 }
 0x3de   : > { %p1266_p3 = por %p1265_p12, %p1264_p8 }
 0x3df   : > { %692 = vrot.lane.b32.xlu1 %v690_v46, %s1408_s23  ;;  %682 = vrot.lane.b32.xlu0 %v680_v47, %s1409_s12 }
 0x3e0   : > { %v552_v3 = vpop.permute.xlu1 %551  ;;  %p1267_p7 = pnand %p1266_p3, %p1260_p4 }
 0x3e1   : > { %v554_v48 = vmul.f32 %v552_v3, %v547_v16 }
 0x439   : > { %v573_v49 = vpop.permute.xlu1 %572  ;;  %v563_v50 = vpop.permute.xlu0 %562 }
 0x43a   : > { %v565_v51 = vadd.f32 %v563_v50, %v554_v48 }
 0x43c   : > { %v575_v52 = vadd.f32 %v573_v49, %v565_v51 }
 0x43d   : > { %v593_v53 = vpop.permute.xlu1 %592  ;;  %v583_v54 = vpop.permute.xlu0 %582 }
 0x43e   : > { %v585_v55 = vadd.f32 %v583_v54, %v575_v52 }
 0x440   : > { %v595_v56 = vadd.f32 %v593_v53, %v585_v55 }
 0x441   : > { %v613_v57 = vpop.permute.xlu1 %612  ;;  %v603_v58 = vpop.permute.xlu0 %602 }
 0x442   : > { %v605_v59 = vadd.f32 %v603_v58, %v595_v56 }
 0x444   : > { %v615_v60 = vadd.f32 %v613_v57, %v605_v59 }
 0x445   : > { %v633_v61 = vpop.permute.xlu1 %632  ;;  %v623_v62 = vpop.permute.xlu0 %622 }
 0x446   : > { %v625_v63 = vadd.f32 %v623_v62, %v615_v60 }
 0x448   : > { %v635_v0 = vadd.f32 %v633_v61, %v625_v63 }
 0x449   : > { %v653_v1 = vpop.permute.xlu1 %652  ;;  %v643_v2 = vpop.permute.xlu0 %642 }
 0x44a   : > { %v645_v4 = vadd.f32 %v643_v2, %v635_v0 }
 0x44c   : > { %v655_v5 = vadd.f32 %v653_v1, %v645_v4 }
 0x44d   : > { %v673_v6 = vpop.permute.xlu1 %672  ;;  %v663_v7 = vpop.permute.xlu0 %662 }
 0x44e   : > { %v665_v8 = vadd.f32 %v663_v7, %v655_v5 }
 0x450   : > { %v675_v9 = vadd.f32 %v673_v6, %v665_v8 }
 0x451   : > { %v683_v10 = vpop.permute.xlu0 %682  ;;  %v693_v12 = vpop.permute.xlu1 %692 }
 0x452   : > { %v685_v11 = vadd.f32 %v683_v10, %v675_v9 }
 0x454   : > { %v695_v13 = vadd.f32 %v693_v12, %v685_v11 }
 0x456   : > { %1019 = vmatmul.mubr.msk.f32.vlgmr.msra.gmra.mrb[2].mxu0 %vm472_vm10, %v695_v13 }
 0x457   : > { %1270 = shalt.err (!%p1267_p7)
}
 0x458   : > { %s1271_s9 = scalar_lea.hbm %s1687_s14, 128  ;;  %s1275_s12 = scalar_lea.hbm %s1764_s5, 256 }
 0x459   : > { %p1272_p10 = scmp.ne.s32.totalorder %s1687_s14, %s1271_s9  ;;  %p1276_p0 = scmp.lt.u32.totalorder %s1687_s14, %s1764_s5 }
 0x45a   : > { %p1277_p9 = scmp.lt.u32.totalorder %s1275_s12, %s1271_s9  ;;  %p1279_p2 = scmp.lt.u32.totalorder %s1271_s9, %s1687_s14 }
 0x45b   : > { %p1273_p13 = pnand %p1272_p10, %p1561_p6 }
 0x45c   : > { %p1278_p11 = por %p1277_p9, %p1276_p0 }
 0x45d   : > { %p1274_p5 = pneg %p1273_p13 }
 0x45e   : > { %p1280_p1 = por %p1279_p2, %p1278_p11 }
 0x460   : > { %p1281_p4 = pnand %p1280_p1, %p1274_p5 }
 0x462   : > { %1284 = shalt.err (!%p1281_p4)
}
 0x463   : > { %1048 = dma.vmem_to_hbm [thread:$0]  (%p1561_p6), %s823_s15, 128, %s1687_s14, %s796_s16   ;;  %vm788_vm5 = vcmask 72704  }
 0x464   : > { %s268_s24 = scalar_lea.vmem [#allocation8], %s954_s27  ;;  %s1715_s9 = scalar_lea.hbm %s1763_s4, %s969_s13 }
 0x465   : > { %s809_s26 = sshll.u32 %s268_s24, 4  ;;  %s791_s29 = scalar_lea.sflag [#allocation4], %s1607_s28  ;;  %s1717_s26 = int_to_ptr.vmem [resolvable:$true] %s809_s26 }
 0x466   : > { %s1285_s14 = scalar_lea.vmem %s1717_s26, 128  ;;  %s1411_s22 = smov [#allocation8]  }
 0x467   : > { %p1286_p8 = scmp.ne.s32.totalorder %s1717_s26, %s1285_s14  ;;  %s1289_s27 = sshll.u32 %s1411_s22, 4  ;;  %s1290_s27 = int_to_ptr.vmem [resolvable:$false] %s1289_s27 }
 0x468   : > { %s1291_s15 = scalar_lea.vmem %s1290_s27, 256  ;;  %p1292_p7 = scmp.lt.s32.totalorder %s1717_s26, %s1290_s27 }
 0x469   : > { %p1287_p12 = pnand %p1286_p8, %p1561_p6  ;;  %p1293_p10 = scmp.lt.s32.totalorder %s1291_s15, %s1285_s14 }
 0x46b   : > { %p1288_p3 = pneg %p1287_p12  ;;  %p1294_p13 = por %p1293_p10, %p1292_p7 }
 0x46d   : > { %p1295_p5 = pnand %p1294_p13, %p1288_p3 }
 0x529   : > { %v784_v14 = vpop.f32.mrb[2].mxu0 }
 0x52a   : > { %789 = vst.msk [vmem:[%s268_s24] sm:$0xff] %vm788_vm5, %v784_v14  ;;  %v1020_v15 = vpop.f32.mrb[3].mxu0 }
 0x52b   : > { %1298 = shalt.err (!%p1295_p5)
}
 0x52c   : > { %s1299_s28 = scalar_lea.hbm %s1715_s9, 128  ;;  %s1303_s23 = scalar_lea.hbm %s1763_s4, 256 }
 0x52d   : > { %p1300_p0 = scmp.ne.s32.totalorder %s1715_s9, %s1299_s28  ;;  %p1304_p2 = scmp.lt.u32.totalorder %s1715_s9, %s1763_s4 }
 0x52e   : > { %p1305_p1 = scmp.lt.u32.totalorder %s1303_s23, %s1299_s28  ;;  %p1307_p8 = scmp.lt.u32.totalorder %s1299_s28, %s1715_s9 }
 0x52f   : > { %p1301_p9 = pnand %p1300_p0, %p1561_p6 }
 0x530   : > { %p1306_p4 = por %p1305_p1, %p1304_p2 }
 0x531   : > { %p1302_p11 = pneg %p1301_p9 }
 0x532   : > { %p1308_p12 = por %p1307_p8, %p1306_p4 }
 0x534   : > { %p1309_p3 = pnand %p1308_p12, %p1302_p11 }
 0x536   : > { %1312 = shalt.err (!%p1309_p3)
}
 0x537   : > { %1047 = dma.vmem_to_hbm [thread:$0]  (%p1561_p6), %s1717_s26, 128, %s1715_s9, %s791_s29  }
 0x538 PF: > { %s834_s8 = sand.u32 1, %s1347_s18   ;;  %p1779_p7 = scmp.ne.s32.totalorder %s1769_s25, 0 }
 0x539   : > { %p1780_p10 = scmp.ge.s32.totalorder %s1359_s21, 2  ;;  %s835_s24 = scalar_lea.sflag [#allocation4], %s834_s8 }
 0x53b   : > { %p1063_p13 = pnand %p1780_p10, %p1779_p7 }
 0x53d   : > { %1338 = dma.done.wait (!%p1063_p13), %s835_s24, 128  }
 0x53e   : > { %1340 = vsyncadd (!%p1063_p13), %s835_s24, 4294967168  ;;  %s844_s30 = scalar_lea.sflag [#allocation10], %s834_s8 }
 0x53f   : > { %1342 = dma.done.wait (!%p1063_p13), %s844_s30, 128  }
 0x540   : > { %1344 = vsyncadd (!%p1063_p13), %s844_s30, 4294967168  ;;  %p23_p6 = scmp.ge.s32.totalorder %s1498_s7, 4   ;;  %s1781_s18 = smov %s1351_s19 }
 0x541   : > { %s1782_s19 = smov %s1355_s20  ;;  %s1783_s20 = smov %s1557_s6 }
 0x542   : > { %s1784_s21 = smov %s1498_s7  ;;  %25 = sbr.rel (!%p23_p6) target bundleno = 8 (0x8), region = 106 }
 0x549   :  { %849 = vsyncpa [#allocation3], 1 }
 0x54a   :  { %851 = vsyncpa [#allocation3 + $0x1], 1 }
 0x54b   :  { %852 = vsyncpa [#allocation6], 1 }
 0x54c   :  { %853 = vsyncpa [#allocation4], 1 }
 0x54d   :  { %855 = vsyncpa [#allocation4 + $0x1], 1 }
 0x54e   :  { %856 = vsyncpa [#allocation10], 1 }
 0x54f   :  { %858 = vsyncpa [#allocation10 + $0x1], 1 }

</bundles_post_ra>
